<compile_context>
chip_gen: v7x
topology: tpu7x:2x2x1
jax: 0.10.0
libtpu: 0.0.40
codegen_flags: <defaults>
</compile_context>

<pallas_src>
import functools

import jax
import jax.numpy as jnp
from jax.experimental import pallas as pl
from jax.experimental.pallas import tpu as pltpu


def _round_up(a, b):
    return (a + b - 1) // b * b


def _conv_bn_silu_kernel(Wp, x_ref, w_ref, b_ref, o_ref):
    # x_ref : (1, (Hp+2)*Wp, K)  bf16 -- column-windowed image, whole batch
    #                                    element resident across h-tiles
    # w_ref : (3, K, Cp)         bf16 -- one slab per row tap, BN scale folded in
    # b_ref : (1, Cp)            f32  -- fused BN bias
    # o_ref : (1, rows, Cp)      f32  -- rows = tile_h * Wp, Cp = 128-padded Cout
    rows = o_ref.shape[1]
    Cp = o_ref.shape[2]
    i = pl.program_id(1)

    acc = jnp.zeros((rows, Cp), jnp.float32)
    # 3 row taps: dynamic but sublane-tile-aligned windows (offsets are
    # multiples of Wp, and Wp % 16 == 0) -> 3 MXU matmuls, f32 accumulation.
    for di in range(3):
        start = pl.multiple_of(i * rows + di * Wp, 16)
        xs = x_ref[0, pl.ds(start, rows), :]                  # (rows, K) bf16
        acc = acc + jnp.dot(xs, w_ref[di],
                            preferred_element_type=jnp.float32)

    y = acc + b_ref[...]                # fused BN bias (scale folded into w)
    y = y * jax.nn.sigmoid(y)           # SiLU (EUP sigmoid + VPU mul)
    o_ref[0, :, :] = y.astype(o_ref.dtype)


def conv_bn_silu(x_nchw, w, scale, bias, *, target_rows=1024):
    """3x3 stride-1 pad-1 conv + fused BN + SiLU.  x_nchw: [N,Cin,H,W] (PyTorch)."""
    N, Cin, H, W = x_nchw.shape
    Cout, Cin_w, kh, kw = w.shape
    assert Cin == Cin_w and (kh, kw) == (3, 3)

    # ---- tiling ----
    Wp = _round_up(W, 16)                       # sublane-tile aligned row stride
    tile_h = max(1, min(H, target_rows // Wp))  # ~target_rows GEMM rows per step
    Hp = _round_up(H, tile_h)                   # pad rows instead of asserting
    n_h = Hp // tile_h
    rows = tile_h * Wp
    Cin_p = _round_up(Cin, 8)
    K = _round_up(3 * Cin_p, 16)                # bf16-tile-aligned contraction dim
    Cout_p = _round_up(Cout, 128)               # lane-dense output

    # ---- glue (plain JAX): NCHW -> NHWC, zero pad, column windows, flatten ----
    x = jnp.transpose(x_nchw, (0, 2, 3, 1))                     # [N,H,W,Cin]
    xpad = jnp.pad(x, ((0, 0), (1, Hp + 1 - H), (1, Wp + 1 - W), (0, Cin_p - Cin)))
    # 3 column taps concatenated on the channel axis (3x HBM, not 9x im2col).
    xcol = jnp.concatenate(
        [xpad[:, :, 0:Wp], xpad[:, :, 1:Wp + 1], xpad[:, :, 2:Wp + 2]], axis=-1)
    xcol = jnp.pad(xcol, ((0, 0), (0, 0), (0, 0), (0, K - 3 * Cin_p)))
    xflat = xcol.reshape(N, (Hp + 2) * Wp, K).astype(jnp.bfloat16)

    # PyTorch weight [Cout,Cin,3,3] -> (3 row taps, K, Cout_p); fold BN scale.
    wt = jnp.transpose(w, (2, 3, 1, 0)) * scale                 # [3,3,Cin,Cout]
    wt = jnp.pad(wt, ((0, 0), (0, 0), (0, Cin_p - Cin), (0, Cout_p - Cout)))
    w_r = wt.reshape(3, 3 * Cin_p, Cout_p)
    w_r = jnp.pad(w_r, ((0, 0), (0, K - 3 * Cin_p), (0, 0))).astype(jnp.bfloat16)
    b = jnp.pad(bias, (0, Cout_p - Cout)).reshape(1, Cout_p).astype(jnp.float32)

    M = N * Hp * Wp
    cost = pl.CostEstimate(
        flops=2 * M * 3 * K * Cout_p,
        transcendentals=M * Cout_p,
        bytes_accessed=xflat.size * 2 + w_r.size * 2 + b.size * 4 + M * Cout_p * 4)

    # TODO(synk): for very large Cin*Cout (late YOLO stages) add a K / Cout grid
    # axis with pl.when init/finalize so the weight block is tiled through VMEM.
    out = pl.pallas_call(
        functools.partial(_conv_bn_silu_kernel, Wp),
        out_shape=jax.ShapeDtypeStruct((N, Hp * Wp, Cout_p), jnp.float32),
        grid_spec=pltpu.PrefetchScalarGridSpec(
            num_scalar_prefetch=0,
            grid=(N, n_h),
            in_specs=[
                # whole column-windowed image of batch element n, resident
                # across the h-tile axis (constant index -> no re-DMA per i)
                pl.BlockSpec((1, (Hp + 2) * Wp, K), lambda n, i: (n, 0, 0)),
                pl.BlockSpec((3, K, Cout_p), lambda n, i: (0, 0, 0)),
                pl.BlockSpec((1, Cout_p), lambda n, i: (0, 0)),
            ],
            out_specs=pl.BlockSpec((1, rows, Cout_p), lambda n, i: (n, i, 0)),
        ),
        compiler_params=pltpu.CompilerParams(
            dimension_semantics=("parallel", "parallel")),
        cost_estimate=cost,
    )(xflat, w_r, b)

    y = out.reshape(N, Hp, Wp, Cout_p)[:, :H, :W, :Cout]    # drop row/col/lane pad
    return jnp.transpose(y, (0, 3, 1, 2))                   # back to NCHW


class QuantizeWrapperPallas:
    """QuantizeWrapper: forward(x) == self.m(x) (pure delegation).

    The wrapped DetectionModel is represented by one YOLO-style Conv block
    (Conv2d 3x3 + fused BatchNorm + SiLU) whose compute runs in Pallas.
    """
    # TODO(synk): the full ultralytics DetectionModel graph is not specified in the
    # module; only the representative Conv+BN+SiLU block is implemented in Pallas.

    def __init__(self, w, bn_gamma, bn_beta, bn_mean, bn_var, eps=1e-3):
        self.w = w
        scale = bn_gamma / jnp.sqrt(bn_var + eps)
        self.scale = scale
        self.bias = bn_beta - bn_mean * scale

    def __call__(self, x):
        return conv_bn_silu(x, self.w, self.scale, self.bias)


def _reference(x, w, scale, bias):
    """Pure-JAX reference using the same bf16-rounded operands as the kernel."""
    xb = x.astype(jnp.bfloat16).astype(jnp.float32)
    wb = (w * scale.reshape(-1, 1, 1, 1)).astype(jnp.bfloat16).astype(jnp.float32)
    y = jax.lax.conv_general_dilated(
        xb, wb, window_strides=(1, 1), padding=((1, 1), (1, 1)),
        dimension_numbers=("NCHW", "OIHW", "NCHW"),
        precision=jax.lax.Precision.HIGHEST)
    y = y + bias.reshape(1, -1, 1, 1)
    return y * jax.nn.sigmoid(y)


if __name__ == "__main__":
    key = jax.random.PRNGKey(0)
    kx, kw_, kg, kb, km, kv = jax.random.split(key, 6)

    N, Cin, H, W = 2, 4, 16, 16
    Cout = 8

    x = jax.random.normal(kx, (N, Cin, H, W), jnp.float32)
    w = jax.random.normal(kw_, (Cout, Cin, 3, 3), jnp.float32) * 0.1
    gamma = jax.random.uniform(kg, (Cout,), jnp.float32, minval=0.5, maxval=1.5)
    beta = jax.random.normal(kb, (Cout,), jnp.float32) * 0.1
    mean = jax.random.normal(km, (Cout,), jnp.float32) * 0.1
    var = jax.random.uniform(kv, (Cout,), jnp.float32, minval=0.5, maxval=1.5)

    model = QuantizeWrapperPallas(w, gamma, beta, mean, var)
    out = jax.block_until_ready(model(x))

    assert out.shape == (N, Cout, H, W), out.shape
    ref = _reference(x, w, model.scale, model.bias)
    err = float(jnp.abs(out - ref).max())
    assert jnp.allclose(out, ref, atol=1e-2, rtol=1e-2), f"mismatch vs reference: {err}"

    print("KERNEL_OK")
</pallas_src>

<mosaic_0001>
module attributes {stable_mosaic.version = 11 : i64} {
  func.func @_conv_bn_silu_kernel(%arg0: i32, %arg1: i32, %arg2: memref<1x288x32xbf16, #tpu.memory_space<vmem>>, %arg3: memref<3x32x128xbf16, #tpu.memory_space<vmem>>, %arg4: memref<1x128xf32, #tpu.memory_space<vmem>>, %arg5: memref<1x256x128xf32, #tpu.memory_space<vmem>>) attributes {dimension_semantics = [#tpu.dimension_semantics<parallel>, #tpu.dimension_semantics<parallel>], iteration_bounds = array<i64: 2, 1>, scalar_prefetch = 0 : i64, scratch_operands = 0 : i64, tpu.core_type = #tpu.core_type<tc>, window_params = [{transform_indices = @transform_0, window_bounds = array<i64: 1, 288, 32>}, {pipeline_mode = #tpu.pipeline_mode<synchronous>, transform_indices = @transform_1, window_bounds = array<i64: 3, 32, 128>}, {pipeline_mode = #tpu.pipeline_mode<synchronous>, transform_indices = @transform_2, window_bounds = array<i64: 1, 128>}, {transform_indices = @transform_3, window_bounds = array<i64: 1, 256, 128>}]} {
    %cst = arith.constant 0.000000e+00 : f32
    %0 = vector.broadcast %cst : f32 to vector<256x128xf32>
    %c256_i32 = arith.constant 256 : i32
    %1 = arith.muli %arg1, %c256_i32 : i32
    %c0_i32 = arith.constant 0 : i32
    %2 = arith.addi %1, %c0_i32 : i32
    %3 = tpu.assume_multiple %2, 16 : i32
    %c0 = arith.constant 0 : index
    %4 = arith.index_cast %3 : i32 to index
    %c0_0 = arith.constant 0 : index
    %5 = vector.load %arg2[%c0, %4, %c0_0] : memref<1x288x32xbf16, #tpu.memory_space<vmem>>, vector<1x256x32xbf16>
    %6 = vector.shape_cast %5 : vector<1x256x32xbf16> to vector<256x32xbf16>
    %c0_1 = arith.constant 0 : index
    %c0_2 = arith.constant 0 : index
    %c0_3 = arith.constant 0 : index
    %7 = vector.load %arg3[%c0_1, %c0_2, %c0_3] : memref<3x32x128xbf16, #tpu.memory_space<vmem>>, vector<1x32x128xbf16>
    %8 = vector.shape_cast %7 : vector<1x32x128xbf16> to vector<32x128xbf16>
    %cst_4 = arith.constant dense<0.000000e+00> : vector<256x128xf32>
    %9 = tpu.matmul %6, %8, %cst_4 {dimension_numbers = #tpu.dot_dimension_numbers<[1], [0], [0], [1], [0, 0, 1, 1], [], []>} : vector<256x32xbf16>, vector<32x128xbf16>, vector<256x128xf32> -> vector<256x128xf32>
    %10 = arith.addf %0, %9 : vector<256x128xf32>
    %c256_i32_5 = arith.constant 256 : i32
    %11 = arith.muli %arg1, %c256_i32_5 : i32
    %c16_i32 = arith.constant 16 : i32
    %12 = arith.addi %11, %c16_i32 : i32
    %13 = tpu.assume_multiple %12, 16 : i32
    %c0_6 = arith.constant 0 : index
    %14 = arith.index_cast %13 : i32 to index
    %c0_7 = arith.constant 0 : index
    %15 = vector.load %arg2[%c0_6, %14, %c0_7] : memref<1x288x32xbf16, #tpu.memory_space<vmem>>, vector<1x256x32xbf16>
    %16 = vector.shape_cast %15 : vector<1x256x32xbf16> to vector<256x32xbf16>
    %c1 = arith.constant 1 : index
    %c0_8 = arith.constant 0 : index
    %c0_9 = arith.constant 0 : index
    %17 = vector.load %arg3[%c1, %c0_8, %c0_9] : memref<3x32x128xbf16, #tpu.memory_space<vmem>>, vector<1x32x128xbf16>
    %18 = vector.shape_cast %17 : vector<1x32x128xbf16> to vector<32x128xbf16>
    %cst_10 = arith.constant dense<0.000000e+00> : vector<256x128xf32>
    %19 = tpu.matmul %16, %18, %cst_10 {dimension_numbers = #tpu.dot_dimension_numbers<[1], [0], [0], [1], [0, 0, 1, 1], [], []>} : vector<256x32xbf16>, vector<32x128xbf16>, vector<256x128xf32> -> vector<256x128xf32>
    %20 = arith.addf %10, %19 : vector<256x128xf32>
    %c256_i32_11 = arith.constant 256 : i32
    %21 = arith.muli %arg1, %c256_i32_11 : i32
    %c32_i32 = arith.constant 32 : i32
    %22 = arith.addi %21, %c32_i32 : i32
    %23 = tpu.assume_multiple %22, 16 : i32
    %c0_12 = arith.constant 0 : index
    %24 = arith.index_cast %23 : i32 to index
    %c0_13 = arith.constant 0 : index
    %25 = vector.load %arg2[%c0_12, %24, %c0_13] : memref<1x288x32xbf16, #tpu.memory_space<vmem>>, vector<1x256x32xbf16>
    %26 = vector.shape_cast %25 : vector<1x256x32xbf16> to vector<256x32xbf16>
    %c2 = arith.constant 2 : index
    %c0_14 = arith.constant 0 : index
    %c0_15 = arith.constant 0 : index
    %27 = vector.load %arg3[%c2, %c0_14, %c0_15] : memref<3x32x128xbf16, #tpu.memory_space<vmem>>, vector<1x32x128xbf16>
    %28 = vector.shape_cast %27 : vector<1x32x128xbf16> to vector<32x128xbf16>
    %cst_16 = arith.constant dense<0.000000e+00> : vector<256x128xf32>
    %29 = tpu.matmul %26, %28, %cst_16 {dimension_numbers = #tpu.dot_dimension_numbers<[1], [0], [0], [1], [0, 0, 1, 1], [], []>} : vector<256x32xbf16>, vector<32x128xbf16>, vector<256x128xf32> -> vector<256x128xf32>
    %30 = arith.addf %20, %29 : vector<256x128xf32>
    %c0_17 = arith.constant 0 : index
    %c0_18 = arith.constant 0 : index
    %31 = vector.load %arg4[%c0_17, %c0_18] : memref<1x128xf32, #tpu.memory_space<vmem>>, vector<1x128xf32>
    %32 = vector.broadcast %31 : vector<1x128xf32> to vector<256x128xf32>
    %33 = arith.addf %30, %32 : vector<256x128xf32>
    %34 = arith.negf %33 : vector<256x128xf32>
    %35 = math.exp %34 : vector<256x128xf32>
    %cst_19 = arith.constant 1.000000e+00 : f32
    %36 = vector.broadcast %cst_19 : f32 to vector<256x128xf32>
    %37 = arith.addf %36, %35 : vector<256x128xf32>
    %38 = arith.divf %36, %37 : vector<256x128xf32>
    %39 = arith.mulf %33, %38 : vector<256x128xf32>
    %c0_20 = arith.constant 0 : index
    %c0_21 = arith.constant 0 : index
    %c0_22 = arith.constant 0 : index
    %40 = vector.load %arg5[%c0_20, %c0_21, %c0_22] : memref<1x256x128xf32, #tpu.memory_space<vmem>>, vector<1x256x128xf32>
    %41 = vector.shape_cast %40 : vector<1x256x128xf32> to vector<256x128xf32>
    %42 = vector.shape_cast %39 : vector<256x128xf32> to vector<1x256x128xf32>
    tpu.vector_store %arg5[%c0_20, %c0_21, %c0_22], %42 {strides = array<i32>} : memref<1x256x128xf32, #tpu.memory_space<vmem>>, vector<1x256x128xf32>,
    return
  }
  func.func @transform_0(%arg0: i32, %arg1: i32) -> (i32, i32, i32) {
    %c0_i32 = arith.constant 0 : i32
    %c0_i32_0 = arith.constant 0 : i32
    %c0_i32_1 = arith.constant 0 : i32
    return %arg0, %c0_i32, %c0_i32_0 : i32, i32, i32
  }
  func.func @transform_1(%arg0: i32, %arg1: i32) -> (i32, i32, i32) {
    %c0_i32 = arith.constant 0 : i32
    %c0_i32_0 = arith.constant 0 : i32
    %c0_i32_1 = arith.constant 0 : i32
    %c0_i32_2 = arith.constant 0 : i32
    return %c0_i32, %c0_i32_0, %c0_i32_1 : i32, i32, i32
  }
  func.func @transform_2(%arg0: i32, %arg1: i32) -> (i32, i32) {
    %c0_i32 = arith.constant 0 : i32
    %c0_i32_0 = arith.constant 0 : i32
    %c0_i32_1 = arith.constant 0 : i32
    return %c0_i32, %c0_i32_0 : i32, i32
  }
  func.func @transform_3(%arg0: i32, %arg1: i32) -> (i32, i32, i32) {
    %c0_i32 = arith.constant 0 : i32
    %c0_i32_0 = arith.constant 0 : i32
    return %arg0, %arg1, %c0_i32 : i32, i32, i32
  }
}

</mosaic_0001>

<bundles_post_ra>
// kernel: tpu_custom_call.1
= control target key start
LH: loop header
LB: loop body
LE: loop exit
PB: predicated region body
PF: predicated region fallthrough
CT: control target
= control target key end

     0   :  { %8 = vsyncpa [#allocation3], 0  ;;  %s2882_s0 = inlined_call_operand.vmem [shape: bf16[2,288,32], index: 0, kind: input, shape index: {}]   ;;  %s2883_s1 = inlined_call_operand.vmem [shape: bf16[3,32,128], index: 1, kind: input, shape index: {}]   ;;  %s2884_s2 = inlined_call_operand.vmem [shape: f32[1,128], index: 2, kind: input, shape index: {}]   ;;  %s2885_s3 = inlined_call_operand.hbm [shape: f32[2,256,128], index: 3, kind: output, shape index: {}]  }
   0x1   :  { %10 = vsyncpa [#allocation3 + $0x1], 0  ;;  %s2429_s12 = smov 0   ;;  %s2431_s13 = smov 0  }
   0x2   :  { %s2433_s14 = smov 0   ;;  %s2435_s15 = smov 0  }
   0x3   :  { %s2437_s16 = smov 0   ;;  %s2439_s17 = smov 0  }
   0x4 LB: > { %s1636_s18 = sadd.s32 4294967295, %s2404_s17   ;;  %s1637_s19 = sadd.s32 4294967294, %s2404_s17   ;;  %s2404_s17 = sphi %s2439_s17, %s16_s17   ;;  %s2400_s16 = sphi %s2437_s16, %s2892_s16   ;;  %s2396_s15 = sphi %s2435_s15, %s2891_s15   ;;  %s2392_s14 = sphi %s2433_s14, %s2890_s14   ;;  %s2388_s13 = sphi %s2431_s13, %s2889_s13   ;;  %s2384_s12 = sphi %s2429_s12, %s2888_s12  }
   0x5   : > { %s28_s20 = sadd.s32 1, %s2400_s16  ;;  %s105_s21 = sadd.s32 1, %s2392_s14 }
   0x6   : > { %p30_p0 = scmp.ge.s32.totalorder %s28_s20, 2  ;;  %p115_p1 = scmp.ne.s32.totalorder %s2392_s14, %s2388_s13 }
   0x7   : > { %p116_p2 = scmp.eq.s32.totalorder %s1636_s18, 1  ;;  %p121_p3 = scmp.ne.s32.totalorder %s2388_s13, %s2384_s12 }
   0x8   : > { %s2894_s20 = smov (%p30_p0, %s28_s20), 0  ;;  %p122_p5 = scmp.eq.s32.totalorder %s1637_s19, 1 }
   0x9   : > { %p2469_p4 = por %p116_p2, %p115_p1  ;;  %s100_s23 = ssub.s32 %s2400_s16, %s2894_s20 }
   0xa   : > { %p1640_p6 = scmp.ge.s32.totalorder %s2404_s17, 1  ;;  %p103_p7 = scmp.eq.s32.totalorder %s100_s23, 0 }
   0xb   : > { %p2476_p8 = por %p122_p5, %p121_p3  ;;  %p154_p9 = scmp.lt.s32.totalorder %s2404_s17, 3 }
   0xc   : > { %s2482_s25 = scalar_select %p103_p7, %s2392_s14, %s105_s21  }
   0xd   : > { %p155_p10 = pnand %p1640_p6, %p154_p9 }
   0xe   : > { %v2144_v0 = vld [vmem:[%s2883_s1 + $0x10] sm:$0xff] (!%p155_p10)   ;;  %p178_p11 = scmp.lt.s32.totalorder (!%p155_p10), %s2396_s15, 1  ;;  %v2145_v1 = vld [vmem:[%s2883_s1] sm:$0xff] (!%p155_p10)   ;;  %v2146_v2 = vld [vmem:[%s2883_s1 + $0x18] sm:$0xff] (!%p155_p10)   ;;  %vm360_vm0 = vcmask (!%p155_p10), 261120   ;;  %s175_s28 = sand.u32 (!%p155_p10), 1, %s2388_s13  }
   0xf   : > { %158 = sbr.rel (%p155_p10) target bundleno = 385 (0x181), region = 32  ;;  %1910 = vmatprep.subr.bf16.mxu1 (!%p155_p10), %v2144_v0  ;;  %1946 = vmatprep.subr.bf16.mxu0 (!%p155_p10), %v2145_v1  ;;  %v2147_v3 = vld [vmem:[%s2883_s1 + $0x8] sm:$0xff] (!%p155_p10)   ;;  %v2152_v4 = vld [vmem:[%s2883_s1 + $0x20] sm:$0xff] (!%p155_p10)   ;;  %s2674_s29 = sshll.u32 (!%p155_p10), %s175_s28, 8 }
  0x10   : > { %1911 = vmatpush3.bf16.msra.mxu1 (!%p155_p10), %v2144_v0  ;;  %1947 = vmatpush3.bf16.msra.mxu0 (!%p155_p10), %v2145_v1  ;;  %v2161_v7 = vld [vmem:[%s2883_s1 + $0x28] sm:$0xff] (!%p155_p10)   ;;  %s2697_s30 = scalar_lea.vmem (!%p155_p10), [#allocation2], %s2674_s29  ;;  %s1855_s4 = sshll.u32 (!%p155_p10), %s2396_s15, 12 }
  0x11   : > { %1912 = vmatprep.subr.bf16.mxu1 (!%p155_p10), %v2146_v2  ;;  %1948 = vmatprep.subr.bf16.mxu0 (!%p155_p10), %v2147_v3  ;;  %s2406_s10 = smov (!%p155_p10), [#allocation2]  }
  0x12   : > { %s2330_s11 = sshll.u32 (!%p155_p10), %s2406_s10, 4  ;;  %s2331_s11 = int_to_ptr.vmem [resolvable:$false] %s2330_s11 }
  0x13   : > { %s2332_s18 = scalar_lea.vmem (!%p155_p10), %s2331_s11, 8192 }
  0x14   : > { %1913 = vmatpush3.bf16.msra.mxu1 (!%p155_p10), %v2146_v2  ;;  %1949 = vmatpush3.bf16.msra.mxu0 (!%p155_p10), %v2147_v3 }
  0x15   : > { %2018 = vmatprep.subr.bf16.mxu1 (!%p155_p10), %v2145_v1  ;;  %1982 = vmatprep.subr.bf16.mxu0 (!%p155_p10), %v2152_v4 }
  0x16   : > { %s179_s5 = scalar_select %p178_p11, %s2396_s15, 1 }
  0x17   : > { %s2836_s15 = scalar_lea.sflag [#allocation3], %s175_s28 }
  0x18   : > { %s2086_s8 = smul.u32 144, %s179_s5  ;;  %s1557_s5 = sshll.u32 %s2697_s30, 4  ;;  %s2828_s5 = int_to_ptr.vmem [resolvable:$true] %s1557_s5 }
  0x19   : > { %s2326_s9 = scalar_lea.vmem %s2828_s5, 4096  ;;  %p2333_p1 = scmp.lt.s32.totalorder %s2828_s5, %s2331_s11 }
  0x1a   : > { %s2504_s19 = scalar_lea.vmem %s2882_s0, %s2086_s8  ;;  %s2826_s8 = scalar_lea.hbm %s2885_s3, %s1855_s4 }
  0x1b   : > { %v2148_v5 = vld [vmem:[%s2504_s19 + $0x8] sm:$0xff]   ;;  %v2149_v6 = vld [vmem:[%s2504_s19] sm:$0xff]   ;;  %v2150_v8 = vld [vmem:[%s2504_s19 + $0x10] sm:$0xff]   ;;  %p2327_p12 = scmp.ne.s32.totalorder %s2828_s5, %s2326_s9  ;;  %p2334_p2 = scmp.lt.s32.totalorder %s2332_s18, %s2326_s9 }
  0x1c   : > { %1914 = vmatprep.mubr.msk.bf16.mxu1 %vm360_vm0, %v2148_v5  ;;  %1950 = vmatprep.mubr.msk.bf16.mxu0 %vm360_vm0, %v2149_v6  ;;  %v2151_v9 = vld [vmem:[%s2504_s19 + $0x8] sm:$0xff]   ;;  %v2153_v10 = vld [vmem:[%s2504_s19 + $0x18] sm:$0xff]   ;;  %v2154_v11 = vld [vmem:[%s2504_s19 + $0x10] sm:$0xff]  }
  0x1d   : > { %1915 = vmatmul.mubr.msk.bf16.vlgmr.msra.gmra.mrb[0].mxu1 %vm360_vm0, %v2150_v8  ;;  %1951 = vmatmul.mubr.msk.bf16.vlgmr.msra.gmra.mrb[0].mxu0 %vm360_vm0, %v2151_v9  ;;  %v2155_v12 = vld [vmem:[%s2504_s19 + $0x20] sm:$0xff]   ;;  %v2156_v13 = vld [vmem:[%s2504_s19 + $0x18] sm:$0xff]   ;;  %v2157_v14 = vld [vmem:[%s2504_s19 + $0x28] sm:$0xff]   ;;  %p2328_p13 = pnand %p2327_p12, %p2469_p4  ;;  %p2335_p3 = por %p2334_p2, %p2333_p1 }
  0x1e   : > { %2020 = vmatpush3.bf16.msra.mxu1 %v2145_v1  ;;  %1983 = vmatpush3.bf16.msra.mxu0 %v2152_v4  ;;  %v2158_v15 = vld [vmem:[%s2504_s19 + $0x20] sm:$0xff]   ;;  %v2159_v16 = vld [vmem:[%s2504_s19 + $0x30] sm:$0xff]   ;;  %v2160_v17 = vld [vmem:[%s2504_s19 + $0x28] sm:$0xff]  }
  0x1f   : > { %1918 = vmatprep.mubr.msk.bf16.mxu1 %vm360_vm0, %v2153_v10  ;;  %1954 = vmatprep.mubr.msk.bf16.mxu0 %vm360_vm0, %v2154_v11  ;;  %v2162_v18 = vld [vmem:[%s2504_s19 + $0x38] sm:$0xff]   ;;  %v2163_v19 = vld [vmem:[%s2504_s19 + $0x30] sm:$0xff]   ;;  %v2164_v20 = vld [vmem:[%s2504_s19 + $0x40] sm:$0xff]   ;;  %p2329_p0 = pneg %p2328_p13 }
  0x20   : > { %1984 = vmatprep.subr.bf16.mxu0 %v2161_v7  ;;  %2019 = vmatprep.subr.bf16.mxu1 %v2147_v3  ;;  %v2165_v21 = vld [vmem:[%s2504_s19 + $0x38] sm:$0xff]   ;;  %v2166_v22 = vld [vmem:[%s2504_s19 + $0x48] sm:$0xff]   ;;  %v2167_v23 = vld [vmem:[%s2504_s19 + $0x10] sm:$0xff]  }
  0x21   : > { %v2168_v24 = vld [vmem:[%s2504_s19 + $0x50] sm:$0xff]   ;;  %v2169_v25 = vld [vmem:[%s2504_s19 + $0x18] sm:$0xff]   ;;  %v2171_v27 = vld [vmem:[%s2504_s19 + $0x20] sm:$0xff]   ;;  %p2336_p5 = pnand %p2335_p3, %p2329_p0 }
  0x22   : > { %2021 = vmatpush3.bf16.msra.mxu1 %v2147_v3  ;;  %1985 = vmatpush3.bf16.msra.mxu0 %v2161_v7  ;;  %v2170_v26 = vld [vmem:[%s2504_s19 + $0x58] sm:$0xff]   ;;  %v2172_v28 = vld [vmem:[%s2504_s19 + $0x60] sm:$0xff]   ;;  %v2173_v29 = vld [vmem:[%s2504_s19 + $0x28] sm:$0xff]  }
  0x23   : > { %v2174_v30 = vld [vmem:[%s2504_s19 + $0x68] sm:$0xff]   ;;  %v2175_v31 = vld [vmem:[%s2504_s19 + $0x30] sm:$0xff]   ;;  %v2177_v33 = vld [vmem:[%s2504_s19 + $0x38] sm:$0xff]  }
  0x24   : > { %v2176_v32 = vld [vmem:[%s2504_s19 + $0x70] sm:$0xff]   ;;  %v2178_v34 = vld [vmem:[%s2504_s19 + $0x78] sm:$0xff]   ;;  %v2179_v35 = vld [vmem:[%s2504_s19 + $0x40] sm:$0xff]  }
  0x25   : > { %1919 = vmatmul.mubr.msk.bf16.gmra.mrb[4].mxu1 %vm360_vm0, %v2155_v12  ;;  %1955 = vmatmul.mubr.msk.bf16.gmra.mrb[4].mxu0 %vm360_vm0, %v2156_v13  ;;  %v2180_v36 = vld [vmem:[%s2504_s19 + $0x80] sm:$0xff]   ;;  %v2181_v37 = vld [vmem:[%s2504_s19 + $0x48] sm:$0xff]   ;;  %v2183_v39 = vld [vmem:[%s2504_s19 + $0x50] sm:$0xff]  }
  0x26   : > { %1922 = vmatprep.mubr.msk.bf16.mxu1 %vm360_vm0, %v2157_v14  ;;  %1958 = vmatprep.mubr.msk.bf16.mxu0 %vm360_vm0, %v2158_v15  ;;  %v2182_v38 = vld [vmem:[%s2504_s19 + $0x40] sm:$0xff]   ;;  %v2184_v40 = vld [vmem:[%s2504_s19 + $0x48] sm:$0xff]   ;;  %v2185_v41 = vld [vmem:[%s2504_s19 + $0x58] sm:$0xff]  }
  0x27   : > { %v2186_v42 = vld [vmem:[%s2504_s19 + $0x50] sm:$0xff]   ;;  %v2187_v43 = vld [vmem:[%s2504_s19 + $0x60] sm:$0xff]   ;;  %v2188_v44 = vld [vmem:[%s2504_s19 + $0x58] sm:$0xff]  }
  0x28   : > { %v2189_v45 = vld [vmem:[%s2504_s19 + $0x68] sm:$0xff]   ;;  %v2190_v46 = vld [vmem:[%s2504_s19 + $0x60] sm:$0xff]   ;;  %v2191_v47 = vld [vmem:[%s2504_s19 + $0x70] sm:$0xff]  }
  0x29   : > { %v2192_v48 = vld [vmem:[%s2504_s19 + $0x68] sm:$0xff]   ;;  %v2193_v49 = vld [vmem:[%s2504_s19 + $0x78] sm:$0xff]   ;;  %v2194_v50 = vld [vmem:[%s2504_s19 + $0x70] sm:$0xff]  }
  0x2a   : > { %v2195_v51 = vld [vmem:[%s2504_s19 + $0x80] sm:$0xff]   ;;  %v2196_v52 = vld [vmem:[%s2504_s19 + $0x78] sm:$0xff]   ;;  %v2197_v53 = vld [vmem:[%s2504_s19 + $0x88] sm:$0xff]  }
  0x2b   : > { %v2618_v7 = vld [vmem:[%s2884_s2] ss:$0 sm:$0xff] }
  0x2d   : > { %1923 = vmatmul.mubr.msk.bf16.gmra.mrb[8].mxu1 %vm360_vm0, %v2159_v16  ;;  %1959 = vmatmul.mubr.msk.bf16.gmra.mrb[8].mxu0 %vm360_vm0, %v2160_v17 }
  0x2e   : > { %1926 = vmatprep.mubr.msk.bf16.mxu1 %vm360_vm0, %v2162_v18  ;;  %1962 = vmatprep.mubr.msk.bf16.mxu0 %vm360_vm0, %v2163_v19 }
  0x35   : > { %1927 = vmatmul.mubr.msk.bf16.gmra.mrb[12].mxu1 %vm360_vm0, %v2164_v20  ;;  %1963 = vmatmul.mubr.msk.bf16.gmra.mrb[12].mxu0 %vm360_vm0, %v2165_v21 }
  0x36   : > { %1930 = vmatprep.mubr.msk.bf16.mxu1 %vm360_vm0, %v2166_v22  ;;  %1986 = vmatprep.mubr.msk.bf16.mxu0 %vm360_vm0, %v2167_v23 }
  0x3d   : > { %1931 = vmatmul.mubr.msk.bf16.gmra.mrb[16].mxu1 %vm360_vm0, %v2168_v24  ;;  %1987 = vmatmul.mubr.msk.bf16.vlgmr.msra.gmra.mrb[0].mxu0 %vm360_vm0, %v2169_v25 }
  0x3e   : > { %1934 = vmatprep.mubr.msk.bf16.mxu1 %vm360_vm0, %v2170_v26  ;;  %1990 = vmatprep.mubr.msk.bf16.mxu0 %vm360_vm0, %v2171_v27 }
  0x45   : > { %1935 = vmatmul.mubr.msk.bf16.gmra.mrb[20].mxu1 %vm360_vm0, %v2172_v28  ;;  %1991 = vmatmul.mubr.msk.bf16.gmra.mrb[4].mxu0 %vm360_vm0, %v2173_v29 }
  0x46   : > { %1938 = vmatprep.mubr.msk.bf16.mxu1 %vm360_vm0, %v2174_v30  ;;  %1994 = vmatprep.mubr.msk.bf16.mxu0 %vm360_vm0, %v2175_v31 }
  0x4d   : > { %1939 = vmatmul.mubr.msk.bf16.gmra.mrb[24].mxu1 %vm360_vm0, %v2176_v32  ;;  %1995 = vmatmul.mubr.msk.bf16.gmra.mrb[8].mxu0 %vm360_vm0, %v2177_v33 }
  0x4e   : > { %1942 = vmatprep.mubr.msk.bf16.mxu1 %vm360_vm0, %v2178_v34  ;;  %1998 = vmatprep.mubr.msk.bf16.mxu0 %vm360_vm0, %v2179_v35 }
  0x55   : > { %1943 = vmatmul.mubr.msk.bf16.gmra.mrb[28].mxu1 %vm360_vm0, %v2180_v36  ;;  %1999 = vmatmul.mubr.msk.bf16.gmra.mrb[12].mxu0 %vm360_vm0, %v2181_v37 }
  0x56   : > { %1966 = vmatprep.mubr.msk.bf16.mxu1 %vm360_vm0, %v2182_v38  ;;  %2002 = vmatprep.mubr.msk.bf16.mxu0 %vm360_vm0, %v2183_v39 }
  0x5d   : > { %1967 = vmatmul.mubr.msk.bf16.vlgmr.msra.gmra.mrb[16].mxu1 %vm360_vm0, %v2184_v40  ;;  %2003 = vmatmul.mubr.msk.bf16.gmra.mrb[16].mxu0 %vm360_vm0, %v2185_v41 }
  0x5e   : > { %1970 = vmatprep.mubr.msk.bf16.mxu1 %vm360_vm0, %v2186_v42  ;;  %2006 = vmatprep.mubr.msk.bf16.mxu0 %vm360_vm0, %v2187_v43 }
  0x65   : > { %1971 = vmatmul.mubr.msk.bf16.gmra.mrb[20].mxu1 %vm360_vm0, %v2188_v44  ;;  %2007 = vmatmul.mubr.msk.bf16.gmra.mrb[20].mxu0 %vm360_vm0, %v2189_v45 }
  0x66   : > { %1974 = vmatprep.mubr.msk.bf16.mxu1 %vm360_vm0, %v2190_v46  ;;  %2010 = vmatprep.mubr.msk.bf16.mxu0 %vm360_vm0, %v2191_v47 }
  0x6d   : > { %1975 = vmatmul.mubr.msk.bf16.gmra.mrb[24].mxu1 %vm360_vm0, %v2192_v48  ;;  %2011 = vmatmul.mubr.msk.bf16.gmra.mrb[24].mxu0 %vm360_vm0, %v2193_v49 }
  0x6e   : > { %1978 = vmatprep.mubr.msk.bf16.mxu1 %vm360_vm0, %v2194_v50  ;;  %2014 = vmatprep.mubr.msk.bf16.mxu0 %vm360_vm0, %v2195_v51 }
  0x75   : > { %1979 = vmatmul.mubr.msk.bf16.gmra.mrb[28].mxu1 %vm360_vm0, %v2196_v52  ;;  %2015 = vmatmul.mubr.msk.bf16.gmra.mrb[28].mxu0 %vm360_vm0, %v2197_v53 }
  0xf0   : > { %v1916_v54 = vpop.f32.mrb[0].mxu1 }
  0xf1   : > { %v443_v55 = vpop.f32.mrb[1].mxu1 }
  0xf2   : > { %v1917_v56 = vpop.f32.mrb[2].mxu1 }
  0xf3   : > { %v446_v57 = vpop.f32.mrb[3].mxu1 }
  0xf8   : > { %v1920_v58 = vpop.f32.mrb[4].mxu1 }
  0xf9   : > { %v459_v59 = vpop.f32.mrb[5].mxu1 }
  0xfa   : > { %v1921_v60 = vpop.f32.mrb[6].mxu1 }
  0xfb   : > { %v462_v61 = vpop.f32.mrb[7].mxu1 }
 0x100   : > { %v1924_v62 = vpop.f32.mrb[8].mxu1 }
 0x101   : > { %v475_v63 = vpop.f32.mrb[9].mxu1 }
 0x102   : > { %v1925_v0 = vpop.f32.mrb[10].mxu1 }
 0x103   : > { %v2605_v1 = vpop.f32.mrb[11].mxu1 }
 0x108   : > { %v2607_v2 = vpop.f32.mrb[12].mxu1 }
 0x109   : > { %v2609_v3 = vpop.f32.mrb[13].mxu1 }
 0x10a   : > { %v2611_v4 = vpop.f32.mrb[14].mxu1 }
 0x10b   : > { %v2613_v5 = vpop.f32.mrb[15].mxu1 }
 0x110   : > { %v1988_v6 = vpop.f32.mrb[0].mxu0 }
 0x111   : > { %v2022_v8 = vadd.f32 %v1988_v6, %v1916_v54  ;;  %v1087_v9 = vpop.f32.mrb[1].mxu0 }
 0x112   : > { %v2023_v10 = vadd.f32 %v1087_v9, %v443_v55  ;;  %v1989_v11 = vpop.f32.mrb[2].mxu0 }
 0x113   : > { %v2621_v12 = vadd.f32 %v2022_v8, %v2618_v7  ;;  %v2024_v13 = vadd.f32 %v1989_v11, %v1917_v56  ;;  %v1090_v14 = vpop.f32.mrb[3].mxu0 }
 0x114   : > { %v2624_v15 = vadd.f32 %v2023_v10, %v2618_v7  ;;  %v2025_v16 = vadd.f32 %v1090_v14, %v446_v57 }
 0x115   : > { %v1820_v17 = vmul.f32 -1.442695, %v2621_v12  ;;  %v2628_v18 = vadd.f32 %v2024_v13, %v2618_v7 }
 0x116   : > { %v1818_v19 = vmul.f32 -1.442695, %v2624_v15  ;;  %v2632_v20 = vadd.f32 %v2025_v16, %v2618_v7 }
 0x117   : > { %2198 = vpow2.f32 %v1820_v17  ;;  %v1821_v21 = vmul.f32 -1.442695, %v2628_v18 }
 0x118   : > { %2200 = vpow2.f32 %v1818_v19  ;;  %v1819_v22 = vmul.f32 -1.442695, %v2632_v20  ;;  %v1992_v23 = vpop.f32.mrb[4].mxu0 }
 0x119   : > { %2202 = vpow2.f32 %v1821_v21  ;;  %v2026_v24 = vadd.f32 %v1992_v23, %v1920_v58  ;;  %v1103_v25 = vpop.f32.mrb[5].mxu0 }
 0x11a   : > { %2204 = vpow2.f32 %v1819_v22  ;;  %v2027_v26 = vadd.f32 %v1103_v25, %v459_v59  ;;  %v1993_v27 = vpop.f32.mrb[6].mxu0 }
 0x11b   : > { %v2637_v28 = vadd.f32 %v2026_v24, %v2618_v7  ;;  %v2028_v29 = vadd.f32 %v1993_v27, %v1921_v60  ;;  %v1106_v30 = vpop.f32.mrb[7].mxu0 }
 0x11c   : > { %v2640_v31 = vadd.f32 %v2027_v26, %v2618_v7  ;;  %v2029_v32 = vadd.f32 %v1106_v30, %v462_v61 }
 0x11d   : > { %v1824_v33 = vmul.f32 -1.442695, %v2637_v28  ;;  %v2644_v34 = vadd.f32 %v2028_v29, %v2618_v7 }
 0x11e   : > { %v1822_v35 = vmul.f32 -1.442695, %v2640_v31  ;;  %v2648_v36 = vadd.f32 %v2029_v32, %v2618_v7 }
 0x11f   : > { %2206 = vpow2.f32 %v1824_v33  ;;  %v1825_v37 = vmul.f32 -1.442695, %v2644_v34 }
 0x120   : > { %2208 = vpow2.f32 %v1822_v35  ;;  %v1823_v38 = vmul.f32 -1.442695, %v2648_v36  ;;  %v1996_v39 = vpop.f32.mrb[8].mxu0 }
 0x121   : > { %v2199_v40 = vpop.eup %2198  ;;  %2210 = vpow2.f32 %v1825_v37  ;;  %v2030_v41 = vadd.f32 %v1996_v39, %v1924_v62  ;;  %v1119_v42 = vpop.f32.mrb[9].mxu0 }
 0x122   : > { %v2201_v43 = vpop.eup %2200  ;;  %v1383_v44 = vadd.f32 1.0, %v2199_v40  ;;  %2212 = vpow2.f32 %v1823_v38  ;;  %v2031_v45 = vadd.f32 %v1119_v42, %v475_v63  ;;  %v1997_v46 = vpop.f32.mrb[10].mxu0 }
 0x123   : > { %v2203_v47 = vpop.eup %2202  ;;  %v1381_v48 = vadd.f32 1.0, %v2201_v43  ;;  %v2653_v49 = vadd.f32 %v2030_v41, %v2618_v7  ;;  %v2032_v50 = vadd.f32 %v1997_v46, %v1925_v0  ;;  %v1122_v51 = vpop.f32.mrb[11].mxu0 }
 0x124   : > { %v2205_v52 = vpop.eup %2204  ;;  %2214 = vrcp.f32 %v1383_v44  ;;  %v1384_v53 = vadd.f32 1.0, %v2203_v47  ;;  %v2656_v54 = vadd.f32 %v2031_v45, %v2618_v7  ;;  %v2033_v55 = vadd.f32 %v1122_v51, %v2605_v1 }
 0x125   : > { %2216 = vrcp.f32 %v1381_v48  ;;  %v1382_v56 = vadd.f32 1.0, %v2205_v52  ;;  %v1828_v57 = vmul.f32 -1.442695, %v2653_v49  ;;  %v2661_v58 = vadd.f32 %v2032_v50, %v2618_v7 }
 0x126   : > { %2218 = vrcp.f32 %v1384_v53  ;;  %v1826_v59 = vmul.f32 -1.442695, %v2656_v54  ;;  %v2665_v60 = vadd.f32 %v2033_v55, %v2618_v7 }
 0x127   : > { %2220 = vrcp.f32 %v1382_v56  ;;  %v1829_v61 = vmul.f32 -1.442695, %v2661_v58 }
 0x128   : > { %2222 = vpow2.f32 %v1828_v57  ;;  %v1827_v62 = vmul.f32 -1.442695, %v2665_v60  ;;  %v2000_v63 = vpop.f32.mrb[12].mxu0 }
 0x129   : > { %v2207_v0 = vpop.eup %2206  ;;  %2224 = vpow2.f32 %v1826_v59  ;;  %v2034_v1 = vadd.f32 %v2000_v63, %v2607_v2  ;;  %v1135_v6 = vpop.f32.mrb[13].mxu0 }
 0x12a   : > { %v2209_v8 = vpop.eup %2208  ;;  %v1387_v9 = vadd.f32 1.0, %v2207_v0  ;;  %2226 = vpow2.f32 %v1829_v61  ;;  %v2035_v10 = vadd.f32 %v1135_v6, %v2609_v3  ;;  %v2001_v11 = vpop.f32.mrb[14].mxu0 }
 0x12b   : > { %v2211_v13 = vpop.eup %2210  ;;  %v1385_v14 = vadd.f32 1.0, %v2209_v8  ;;  %2228 = vpow2.f32 %v1827_v62  ;;  %v2677_v16 = vadd.f32 %v2034_v1, %v2618_v7  ;;  %v2036_v17 = vadd.f32 %v2001_v11, %v2611_v4  ;;  %v1138_v19 = vpop.f32.mrb[15].mxu0 }
 0x12c   : > { %v2213_v2 = vpop.eup %2212  ;;  %2230 = vrcp.f32 %v1387_v9  ;;  %v1388_v21 = vadd.f32 1.0, %v2211_v13  ;;  %v2681_v22 = vadd.f32 %v2035_v10, %v2618_v7  ;;  %v2037_v3 = vadd.f32 %v1138_v19, %v2613_v5 }
 0x12d   : > { %2232 = vrcp.f32 %v1385_v14  ;;  %v1386_v23 = vadd.f32 1.0, %v2213_v2  ;;  %v1832_v24 = vmul.f32 -1.442695, %v2677_v16  ;;  %v2686_v25 = vadd.f32 %v2036_v17, %v2618_v7 }
 0x12e   : > { %v2215_v26 = vpop.eup %2214  ;;  %2234 = vrcp.f32 %v1388_v21  ;;  %v1830_v4 = vmul.f32 -1.442695, %v2681_v22  ;;  %v2690_v27 = vadd.f32 %v2037_v3, %v2618_v7 }
 0x12f   : > { %v2217_v29 = vpop.eup %2216  ;;  %v1479_v30 = vmul.f32 %v2215_v26, %v2621_v12  ;;  %2236 = vrcp.f32 %v1386_v23  ;;  %v1833_v5 = vmul.f32 -1.442695, %v2686_v25 }
 0x130   : > { %v1968_v32 = vpop.f32.mrb[16].mxu1  ;;  %v2219_v33 = vpop.eup %2218  ;;  %v1477_v35 = vmul.f32 %v2217_v29, %v2624_v15  ;;  %2238 = vpow2.f32 %v1832_v24  ;;  %v1831_v37 = vmul.f32 -1.442695, %v2690_v27 }
 0x131   : > { %v2004_v38 = vpop.f32.mrb[16].mxu0  ;;  %v808_v39 = vpop.f32.mrb[17].mxu1  ;;  %1511 = vst [vmem:[%s2697_s30 + $0x10] sm:$0xff] %v1479_v30  ;;  %v1480_v12 = vmul.f32 %v2219_v33, %v2628_v18  ;;  %2240 = vpow2.f32 %v1830_v4 }
 0x132   : > { %v2221_v40 = vpop.eup %2220  ;;  %v2038_v41 = vadd.f32 %v2004_v38, %v1968_v32  ;;  %v1151_v42 = vpop.f32.mrb[17].mxu0  ;;  %1509 = vst [vmem:[%s2697_s30] sm:$0xff] %v1477_v35  ;;  %2242 = vpow2.f32 %v1833_v5 }
 0x133   : > { %v1969_v43 = vpop.f32.mrb[18].mxu1  ;;  %v2223_v15 = vpop.eup %2222  ;;  %v1478_v44 = vmul.f32 %v2221_v40, %v2632_v20  ;;  %v2039_v45 = vadd.f32 %v1151_v42, %v808_v39  ;;  %1512 = vst [vmem:[%s2697_s30 + $0x18] sm:$0xff] %v1480_v12  ;;  %2244 = vpow2.f32 %v1831_v37 }
 0x134   : > { %v2005_v46 = vpop.f32.mrb[18].mxu0  ;;  %v811_v47 = vpop.f32.mrb[19].mxu1  ;;  %v1391_v50 = vadd.f32 1.0, %v2223_v15  ;;  %v2705_v51 = vadd.f32 %v2038_v41, %v2618_v7 }
 0x135   : > { %v2225_v48 = vpop.eup %2224  ;;  %v2040_v18 = vadd.f32 %v2005_v46, %v1969_v43  ;;  %v1154_v52 = vpop.f32.mrb[19].mxu0  ;;  %1510 = vst [vmem:[%s2697_s30 + $0x8] sm:$0xff] %v1478_v44  ;;  %v2709_v56 = vadd.f32 %v2039_v45, %v2618_v7 }
 0x136   : > { %v2227_v53 = vpop.eup %2226  ;;  %v1389_v55 = vadd.f32 1.0, %v2225_v48  ;;  %v2041_v20 = vadd.f32 %v1154_v52, %v811_v47  ;;  %2246 = vrcp.f32 %v1391_v50  ;;  %v1836_v61 = vmul.f32 -1.442695, %v2705_v51 }
 0x137   : > { %v2229_v57 = vpop.eup %2228  ;;  %v1392_v59 = vadd.f32 1.0, %v2227_v53  ;;  %v2713_v62 = vadd.f32 %v2040_v18, %v2618_v7  ;;  %v1834_v1 = vmul.f32 -1.442695, %v2709_v56 }
 0x138   : > { %v2231_v63 = vpop.eup %2230  ;;  %2248 = vrcp.f32 %v1389_v55  ;;  %v1390_v0 = vadd.f32 1.0, %v2229_v57  ;;  %v2717_v6 = vadd.f32 %v2041_v20, %v2618_v7  ;;  %v1972_v11 = vpop.f32.mrb[20].mxu1 }
 0x139   : > { %v2233_v8 = vpop.eup %2232  ;;  %v1483_v9 = vmul.f32 %v2231_v63, %v2637_v28  ;;  %2250 = vrcp.f32 %v1392_v59  ;;  %v1837_v10 = vmul.f32 -1.442695, %v2713_v62  ;;  %v2008_v19 = vpop.f32.mrb[20].mxu0 }
 0x13a   : > { %v2235_v13 = vpop.eup %2234  ;;  %v1481_v14 = vmul.f32 %v2233_v8, %v2640_v31  ;;  %2252 = vrcp.f32 %v1390_v0  ;;  %v1835_v17 = vmul.f32 -1.442695, %v2717_v6  ;;  %v824_v2 = vpop.f32.mrb[21].mxu1  ;;  %v2042_v28 = vadd.f32 %v2008_v19, %v1972_v11 }
 0x13b   : > { %v2237_v21 = vpop.eup %2236  ;;  %1515 = vst [vmem:[%s2697_s30 + $0x30] sm:$0xff] %v1483_v9  ;;  %v1484_v3 = vmul.f32 %v2235_v13, %v2644_v34  ;;  %2254 = vpow2.f32 %v1836_v61  ;;  %v1167_v23 = vpop.f32.mrb[21].mxu0 }
 0x13c   : > { %v1973_v24 = vpop.f32.mrb[22].mxu1  ;;  %v2239_v26 = vpop.eup %2238  ;;  %1513 = vst [vmem:[%s2697_s30 + $0x20] sm:$0xff] %v1481_v14  ;;  %v1482_v4 = vmul.f32 %v2237_v21, %v2648_v36  ;;  %2256 = vpow2.f32 %v1834_v1  ;;  %v2043_v31 = vadd.f32 %v1167_v23, %v824_v2  ;;  %v2729_v33 = vadd.f32 %v2042_v28, %v2618_v7 }
 0x13d   : > { %v2009_v29 = vpop.f32.mrb[22].mxu0  ;;  %v827_v30 = vpop.f32.mrb[23].mxu1  ;;  %1516 = vst [vmem:[%s2697_s30 + $0x38] sm:$0xff] %v1484_v3  ;;  %v1395_v32 = vadd.f32 1.0, %v2239_v26  ;;  %2258 = vpow2.f32 %v1837_v10 }
 0x13e   : > { %v2241_v5 = vpop.eup %2240  ;;  %v2044_v34 = vadd.f32 %v2009_v29, %v1973_v24  ;;  %v1170_v35 = vpop.f32.mrb[23].mxu0  ;;  %1514 = vst [vmem:[%s2697_s30 + $0x28] sm:$0xff] %v1482_v4  ;;  %2260 = vpow2.f32 %v1835_v17  ;;  %v2733_v39 = vadd.f32 %v2043_v31, %v2618_v7  ;;  %v1840_v41 = vmul.f32 -1.442695, %v2729_v33 }
 0x13f   : > { %v2243_v37 = vpop.eup %2242  ;;  %v1393_v38 = vadd.f32 1.0, %v2241_v5  ;;  %v2045_v36 = vadd.f32 %v1170_v35, %v827_v30  ;;  %2262 = vrcp.f32 %v1395_v32 }
 0x140   : > { %v2245_v40 = vpop.eup %2244  ;;  %v1396_v12 = vadd.f32 1.0, %v2243_v37  ;;  %v2737_v42 = vadd.f32 %v2044_v34, %v2618_v7  ;;  %v1838_v15 = vmul.f32 -1.442695, %v2733_v39  ;;  %v1976_v47 = vpop.f32.mrb[24].mxu1 }
 0x141   : > { %2264 = vrcp.f32 %v1393_v38  ;;  %v1394_v43 = vadd.f32 1.0, %v2245_v40  ;;  %v2741_v44 = vadd.f32 %v2045_v36, %v2618_v7  ;;  %v2247_v45 = vpop.eup %2246  ;;  %v2012_v52 = vpop.f32.mrb[24].mxu0 }
 0x142   : > { %2266 = vrcp.f32 %v1396_v12  ;;  %v1841_v46 = vmul.f32 -1.442695, %v2737_v42  ;;  %v2249_v48 = vpop.eup %2248  ;;  %v1487_v50 = vmul.f32 %v2247_v45, %v2653_v49  ;;  %v840_v53 = vpop.f32.mrb[25].mxu1  ;;  %v2046_v57 = vadd.f32 %v2012_v52, %v1976_v47 }
 0x143   : > { %2268 = vrcp.f32 %v1394_v43  ;;  %v1839_v18 = vmul.f32 -1.442695, %v2741_v44  ;;  %v2251_v55 = vpop.eup %2250  ;;  %v1485_v20 = vmul.f32 %v2249_v48, %v2656_v54  ;;  %v1183_v59 = vpop.f32.mrb[25].mxu0 }
 0x144   : > { %2270 = vpow2.f32 %v1840_v41  ;;  %v1977_v61 = vpop.f32.mrb[26].mxu1  ;;  %v2253_v63 = vpop.eup %2252  ;;  %1519 = vst [vmem:[%s2697_s30 + $0x50] sm:$0xff] %v1487_v50  ;;  %v1488_v0 = vmul.f32 %v2251_v55, %v2661_v58  ;;  %v2047_v49 = vadd.f32 %v1183_v59, %v840_v53  ;;  %v2752_v54 = vadd.f32 %v2046_v57, %v2618_v7 }
 0x145   : > { %2272 = vpow2.f32 %v1838_v15  ;;  %v2013_v1 = vpop.f32.mrb[26].mxu0  ;;  %v843_v8 = vpop.f32.mrb[27].mxu1  ;;  %1517 = vst [vmem:[%s2697_s30 + $0x40] sm:$0xff] %v1485_v20  ;;  %v1486_v10 = vmul.f32 %v2253_v63, %v2665_v60 }
 0x146   : > { %v2255_v9 = vpop.eup %2254  ;;  %2274 = vpow2.f32 %v1841_v46  ;;  %v2048_v11 = vadd.f32 %v2013_v1, %v1977_v61  ;;  %v1186_v13 = vpop.f32.mrb[27].mxu0  ;;  %1520 = vst [vmem:[%s2697_s30 + $0x58] sm:$0xff] %v1488_v0  ;;  %v2756_v58 = vadd.f32 %v2047_v49, %v2618_v7  ;;  %v1844_v23 = vmul.f32 -1.442695, %v2752_v54 }
 0x147   : > { %v2257_v14 = vpop.eup %2256  ;;  %v1399_v17 = vadd.f32 1.0, %v2255_v9  ;;  %2276 = vpow2.f32 %v1839_v18  ;;  %v2049_v19 = vadd.f32 %v1186_v13, %v843_v8  ;;  %1518 = vst [vmem:[%s2697_s30 + $0x48] sm:$0xff] %v1486_v10 }
 0x148   : > { %v2259_v2 = vpop.eup %2258  ;;  %v1397_v21 = vadd.f32 1.0, %v2257_v14  ;;  %v2760_v3 = vadd.f32 %v2048_v11, %v2618_v7  ;;  %v1842_v31 = vmul.f32 -1.442695, %v2756_v58  ;;  %v1980_v29 = vpop.f32.mrb[28].mxu1 }
 0x149   : > { %v2261_v60 = vpop.eup %2260  ;;  %2278 = vrcp.f32 %v1399_v17  ;;  %v1400_v28 = vadd.f32 1.0, %v2259_v2  ;;  %v2764_v24 = vadd.f32 %v2049_v19, %v2618_v7  ;;  %v2016_v34 = vpop.f32.mrb[28].mxu0 }
 0x14a   : > { %v2263_v26 = vpop.eup %2262  ;;  %2280 = vrcp.f32 %v1397_v21  ;;  %v1398_v4 = vadd.f32 1.0, %v2261_v60  ;;  %v1845_v32 = vmul.f32 -1.442695, %v2760_v3  ;;  %v856_v35 = vpop.f32.mrb[29].mxu1  ;;  %v2050_v40 = vadd.f32 %v2016_v34, %v1980_v29 }
 0x14b   : > { %v2265_v30 = vpop.eup %2264  ;;  %v1491_v5 = vmul.f32 %v2263_v26, %v2677_v16  ;;  %2282 = vrcp.f32 %v1400_v28  ;;  %v1843_v36 = vmul.f32 -1.442695, %v2764_v24  ;;  %v1199_v12 = vpop.f32.mrb[29].mxu0 }
 0x14c   : > { %v2267_v37 = vpop.eup %2266  ;;  %v1489_v38 = vmul.f32 %v2265_v30, %v2681_v22  ;;  %2284 = vrcp.f32 %v1398_v4  ;;  %v1981_v41 = vpop.f32.mrb[30].mxu1  ;;  %v2051_v15 = vadd.f32 %v1199_v12, %v856_v35  ;;  %v2776_v48 = vadd.f32 %v2050_v40, %v2618_v7 }
 0x14d   : > { %v2269_v43 = vpop.eup %2268  ;;  %1523 = vst [vmem:[%s2697_s30 + $0x70] sm:$0xff] %v1491_v5  ;;  %v1492_v16 = vmul.f32 %v2267_v37, %v2686_v25  ;;  %2286 = vpow2.f32 %v1844_v23  ;;  %v2017_v45 = vpop.f32.mrb[30].mxu0 }
 0x14e   : > { %v859_v46 = vpop.f32.mrb[31].mxu1  ;;  %v2271_v47 = vpop.eup %2270  ;;  %1521 = vst [vmem:[%s2697_s30 + $0x60] sm:$0xff] %v1489_v38  ;;  %v1490_v22 = vmul.f32 %v2269_v43, %v2690_v27  ;;  %2288 = vpow2.f32 %v1842_v31  ;;  %v2052_v50 = vadd.f32 %v2017_v45, %v1981_v41  ;;  %v2780_v25 = vadd.f32 %v2051_v15, %v2618_v7 }
 0x14f   : > { %v1202_v18 = vpop.f32.mrb[31].mxu0  ;;  %v2273_v52 = vpop.eup %2272  ;;  %1524 = vst [vmem:[%s2697_s30 + $0x78] sm:$0xff] %v1492_v16  ;;  %v1403_v53 = vadd.f32 1.0, %v2271_v47  ;;  %2290 = vpow2.f32 %v1845_v32  ;;  %v1848_v63 = vmul.f32 -1.442695, %v2776_v48 }
 0x150   : > { %v2053_v55 = vadd.f32 %v1202_v18, %v859_v46  ;;  %v2275_v20 = vpop.eup %2274  ;;  %1522 = vst [vmem:[%s2697_s30 + $0x68] sm:$0xff] %v1490_v22  ;;  %v1401_v57 = vadd.f32 1.0, %v2273_v52  ;;  %2292 = vpow2.f32 %v1843_v36  ;;  %v2784_v27 = vadd.f32 %v2052_v50, %v2618_v7 }
 0x151   : > { %v2277_v59 = vpop.eup %2276  ;;  %2294 = vrcp.f32 %v1403_v53  ;;  %v1404_v61 = vadd.f32 1.0, %v2275_v20  ;;  %v1846_v1 = vmul.f32 -1.442695, %v2780_v25 }
 0x152   : > { %v2788_v0 = vadd.f32 %v2053_v55, %v2618_v7  ;;  %2296 = vrcp.f32 %v1401_v57  ;;  %v1402_v49 = vadd.f32 1.0, %v2277_v59  ;;  %v1849_v9 = vmul.f32 -1.442695, %v2784_v27 }
 0x153   : > { %v2279_v8 = vpop.eup %2278  ;;  %2298 = vrcp.f32 %v1404_v61 }
 0x154   : > { %v2281_v10 = vpop.eup %2280  ;;  %v1495_v11 = vmul.f32 %v2279_v8, %v2705_v51  ;;  %2300 = vrcp.f32 %v1402_v49  ;;  %v1847_v13 = vmul.f32 -1.442695, %v2788_v0 }
 0x155   : > { %v2283_v14 = vpop.eup %2282  ;;  %v1493_v7 = vmul.f32 %v2281_v10, %v2709_v56  ;;  %2302 = vpow2.f32 %v1848_v63 }
 0x156   : > { %v2285_v17 = vpop.eup %2284  ;;  %1527 = vst [vmem:[%s2697_s30 + $0x90] sm:$0xff] %v1495_v11  ;;  %v1496_v19 = vmul.f32 %v2283_v14, %v2713_v62  ;;  %2304 = vpow2.f32 %v1846_v1 }
 0x157   : > { %v2287_v2 = vpop.eup %2286  ;;  %1525 = vst [vmem:[%s2697_s30 + $0x80] sm:$0xff] %v1493_v7  ;;  %v1494_v21 = vmul.f32 %v2285_v17, %v2717_v6  ;;  %2306 = vpow2.f32 %v1849_v9 }
 0x158   : > { %v2289_v60 = vpop.eup %2288  ;;  %1528 = vst [vmem:[%s2697_s30 + $0x98] sm:$0xff] %v1496_v19  ;;  %v1407_v51 = vadd.f32 1.0, %v2287_v2  ;;  %2308 = vpow2.f32 %v1847_v13 }
 0x159   : > { %v2291_v28 = vpop.eup %2290  ;;  %1526 = vst [vmem:[%s2697_s30 + $0x88] sm:$0xff] %v1494_v21  ;;  %v1405_v23 = vadd.f32 1.0, %v2289_v60 }
 0x15a   : > { %v2293_v56 = vpop.eup %2292  ;;  %2310 = vrcp.f32 %v1407_v51  ;;  %v1408_v26 = vadd.f32 1.0, %v2291_v28 }
 0x15b   : > { %v2295_v4 = vpop.eup %2294  ;;  %2312 = vrcp.f32 %v1405_v23  ;;  %v1406_v62 = vadd.f32 1.0, %v2293_v56 }
 0x15c   : > { %v2297_v31 = vpop.eup %2296  ;;  %v1499_v6 = vmul.f32 %v2295_v4, %v2729_v33  ;;  %2314 = vrcp.f32 %v1408_v26 }
 0x15d   : > { %v2299_v29 = vpop.eup %2298  ;;  %v1497_v30 = vmul.f32 %v2297_v31, %v2733_v39  ;;  %2316 = vrcp.f32 %v1406_v62 }
 0x15e   : > { %v2301_v5 = vpop.eup %2300  ;;  %1531 = vst [vmem:[%s2697_s30 + $0xb0] sm:$0xff] %v1499_v6  ;;  %v1500_v32 = vmul.f32 %v2299_v29, %v2737_v42 }
 0x15f   : > { %v2303_v34 = vpop.eup %2302  ;;  %1529 = vst [vmem:[%s2697_s30 + $0xa0] sm:$0xff] %v1497_v30  ;;  %v1498_v35 = vmul.f32 %v2301_v5, %v2741_v44 }
 0x160   : > { %v2305_v37 = vpop.eup %2304  ;;  %1532 = vst [vmem:[%s2697_s30 + $0xb8] sm:$0xff] %v1500_v32  ;;  %v1411_v38 = vadd.f32 1.0, %v2303_v34 }
 0x161   : > { %v2307_v36 = vpop.eup %2306  ;;  %1530 = vst [vmem:[%s2697_s30 + $0xa8] sm:$0xff] %v1498_v35  ;;  %v1409_v33 = vadd.f32 1.0, %v2305_v37 }
 0x162   : > { %v2309_v40 = vpop.eup %2308  ;;  %2318 = vrcp.f32 %v1411_v38  ;;  %v1412_v39 = vadd.f32 1.0, %v2307_v36 }
 0x163   : > { %2320 = vrcp.f32 %v1409_v33  ;;  %v1410_v12 = vadd.f32 1.0, %v2309_v40 }
 0x164   : > { %v2311_v42 = vpop.eup %2310  ;;  %2322 = vrcp.f32 %v1412_v39 }
 0x165   : > { %v2313_v44 = vpop.eup %2312  ;;  %v1503_v41 = vmul.f32 %v2311_v42, %v2752_v54  ;;  %2324 = vrcp.f32 %v1410_v12 }
 0x166   : > { %v2315_v43 = vpop.eup %2314  ;;  %v1501_v16 = vmul.f32 %v2313_v44, %v2756_v58 }
 0x167   : > { %v2317_v15 = vpop.eup %2316  ;;  %1535 = vst [vmem:[%s2697_s30 + $0xd0] sm:$0xff] %v1503_v41  ;;  %v1504_v45 = vmul.f32 %v2315_v43, %v2760_v3 }
 0x168   : > { %1533 = vst [vmem:[%s2697_s30 + $0xc0] sm:$0xff] %v1501_v16  ;;  %v1502_v46 = vmul.f32 %v2317_v15, %v2764_v24 }
 0x169   : > { %1536 = vst [vmem:[%s2697_s30 + $0xd8] sm:$0xff] %v1504_v45 }
 0x16a   : > { %1534 = vst [vmem:[%s2697_s30 + $0xc8] sm:$0xff] %v1502_v46 }
 0x16c   : > { %v2319_v47 = vpop.eup %2318 }
 0x16d   : > { %v2321_v54 = vpop.eup %2320  ;;  %v1507_v58 = vmul.f32 %v2319_v47, %v2776_v48 }
 0x16e   : > { %v2323_v22 = vpop.eup %2322  ;;  %v1505_v50 = vmul.f32 %v2321_v54, %v2780_v25 }
 0x16f   : > { %v2325_v3 = vpop.eup %2324  ;;  %1539 = vst [vmem:[%s2697_s30 + $0xf0] sm:$0xff] %v1507_v58  ;;  %v1508_v18 = vmul.f32 %v2323_v22, %v2784_v27 }
 0x170   : > { %1537 = vst [vmem:[%s2697_s30 + $0xe0] sm:$0xff] %v1505_v50  ;;  %v1506_v24 = vmul.f32 %v2325_v3, %v2788_v0 }
 0x171   : > { %1540 = vst [vmem:[%s2697_s30 + $0xf8] sm:$0xff] %v1508_v18 }
 0x172   : > { %1538 = vst [vmem:[%s2697_s30 + $0xe8] sm:$0xff] %v1506_v24 }
 0x173   : > { %2339 = shalt.err (!%p2336_p5)
}
 0x174   : > { %s2340_s19 = scalar_lea.hbm %s2826_s8, 4096  ;;  %s2344_s26 = scalar_lea.hbm %s2885_s3, 8192 }
 0x175   : > { %p2341_p6 = scmp.ne.s32.totalorder %s2826_s8, %s2340_s19  ;;  %p2345_p10 = scmp.lt.u32.totalorder %s2826_s8, %s2885_s3 }
 0x176   : > { %p2346_p11 = scmp.lt.u32.totalorder %s2344_s26, %s2340_s19  ;;  %p2348_p13 = scmp.lt.u32.totalorder %s2340_s19, %s2826_s8 }
 0x177   : > { %p2342_p7 = pnand %p2341_p6, %p2469_p4 }
 0x178   : > { %p2347_p12 = por %p2346_p11, %p2345_p10 }
 0x179   : > { %p2343_p9 = pneg %p2342_p7 }
 0x17a   : > { %p2349_p0 = por %p2348_p13, %p2347_p12 }
 0x17c   : > { %p2350_p1 = pnand %p2349_p0, %p2343_p9 }
 0x17e   : > { %2353 = shalt.err (!%p2350_p1)
}
 0x17f   : > { %s2407_s29 = smov 128   ;;  %s2408_s30 = smov 8  }
 0x180   : > { %2087 = dma.vmem_to_hbm [thread:$0]  (%p2469_p4), %s2828_s5, 4096, %s2826_s8, %s2836_s15, %s2407_s29, %s2407_s29, %s2408_s30  }
 0x181 PF: > { %p2093_p2 = scmp.ge.s32.totalorder %s2404_s17, 2  ;;  %s1572_s4 = sand.u32 1, %s2384_s12  }
 0x182   : > { %s1573_s6 = scalar_lea.sflag [#allocation3], %s1572_s4 }
 0x183   : > { %p2090_p3 = pnand %p2093_p2, %p2476_p8 }
 0x185   : > { %2379 = dma.done.wait (!%p2090_p3), %s1573_s6, 4096  }
 0x186   : > { %2381 = vsyncadd (!%p2090_p3), %s1573_s6, 4294963200  ;;  %s16_s17 = sadd.s32 1, %s2404_s17   ;;  %s2888_s12 = smov %s2388_s13 }
 0x187   : > { %p13_p5 = scmp.ge.s32.totalorder %s16_s17, 4   ;;  %s2889_s13 = smov %s2392_s14 }
 0x188   : > { %s2890_s14 = smov %s2482_s25  ;;  %s2891_s15 = smov %s2400_s16 }
 0x189   : > { %s2892_s16 = smov %s2894_s20  ;;  %15 = sbr.rel (!%p13_p5) target bundleno = 4 (0x4), region = 72 }
 0x190   :  { %1578 = vsyncpa [#allocation3], 1 }
 0x191   :  { %1580 = vsyncpa [#allocation3 + $0x1], 1 }

</bundles_post_ra>
